<compile_context>
chip_gen: v6e
topology: v6e:2x2x1
jax: 0.10.0
libtpu: 0.0.40
codegen_flags: <defaults>
</compile_context>

<pallas_src>
import functools
import math

import jax
import jax.numpy as jnp
from jax.experimental import pallas as pl
from jax.experimental.pallas import tpu as pltpu


def _round_up(x, m):
    return ((x + m - 1) // m) * m


def _sine_encoding_kernel(e_ref, pw_ref, wf_ref, out_ref, *, kc):
    # e_ref  : (TM, KC)    packed e rows + a constant-1 column (+ zero pad)
    # pw_ref : (2*KC, KH)  rows [0:KC)  = angle matrix (100*div blocks, phase row)
    #                      rows [KC:2KC)= linear matrix (w0 blocks, bias row)
    # wf_ref : (KH, KH)    block-diagonal [sin|cos] -> hidden projection
    # out_ref: (TM, KH)
    e = e_ref[...]
    pe = jnp.dot(e, pw_ref[0:kc, :], preferred_element_type=jnp.float32)
    s = jnp.sin(pe)
    acc = jnp.dot(s, wf_ref[...], preferred_element_type=jnp.float32)
    acc = acc + jnp.dot(e, pw_ref[kc:2 * kc, :],
                        preferred_element_type=jnp.float32)
    out_ref[...] = acc.astype(out_ref.dtype)


def sine_encoding(e, weight, bias, hidden_dim, *, tm_target=2048):
    """e: (B, N) f32.  weight: (H, H+1) (PyTorch Linear layout).  bias: (H,)."""
    B, N = e.shape
    H = hidden_dim
    assert H % 2 == 0, "hidden_dim must be even"
    H2 = H // 2

    # ---- constant tables --------------------------------------------------
    div = jnp.exp(jnp.arange(0, H, 2, dtype=jnp.float32) *
                  (-math.log(10000.0) / H))
    divp = 100.0 * jnp.concatenate([div, div])                 # (H,)
    offs = jnp.concatenate([jnp.zeros((H2,), jnp.float32),
                            jnp.full((H2,), math.pi / 2, jnp.float32)])

    wt = weight.T.astype(jnp.float32)                          # (H+1, H)
    w0 = wt[0]                                                 # (H,)
    wf = wt[1:]                                                # (H, H)
    b = bias.astype(jnp.float32)                               # (H,)

    # ---- row packing factor: make the output lane-dense --------------------
    k = math.lcm(H, 128) // H
    if k > 1 and k * H > 1024:      # unfriendly H: fall back to no packing
        k = 1
    KH = k * H
    KC = max(8, _round_up(k + 1, 8))    # k e-columns + 1 ones-column, pad to 8

    eye = jnp.eye(k, dtype=jnp.float32)
    ang = jnp.zeros((KC, KH), jnp.float32)
    ang = ang.at[:k, :].set(jnp.kron(eye, divp[None, :]))      # freq blocks
    ang = ang.at[k, :].set(jnp.tile(offs, k))                  # phase (cos) row
    lin = jnp.zeros((KC, KH), jnp.float32)
    lin = lin.at[:k, :].set(jnp.kron(eye, w0[None, :]))        # "e" column wgt
    lin = lin.at[k, :].set(jnp.tile(b, k))                     # bias row
    pw = jnp.concatenate([ang, lin], axis=0)                   # (2*KC, KH)
    wf_bd = jnp.kron(eye, wf)                                  # (KH, KH)

    # ---- pack e rows --------------------------------------------------------
    M = B * N
    Mp = -(-M // k)
    e_flat = e.reshape(-1).astype(jnp.float32)
    if Mp * k != M:
        e_flat = jnp.pad(e_flat, (0, Mp * k - M))
    e_pack = jnp.zeros((Mp, KC), jnp.float32)
    e_pack = e_pack.at[:, :k].set(e_flat.reshape(Mp, k))
    e_pack = e_pack.at[:, k].set(1.0)

    # ---- budget-driven row tile --------------------------------------------
    KHp = _round_up(KH, 128)                 # lane-padded width in VMEM
    KHs = _round_up(KH, 8)
    # worst case (fallback path double-buffers the residents too)
    resident = 4 * (2 * KHs * KHp + 2 * (2 * KC) * KHp)
    row_bytes = 4 * 2 * (_round_up(KC, 128) + KHp)   # e + out, double-buffered
    budget = 40 * 1024 * 1024
    tm = min(tm_target, max(8, (budget - resident) // row_bytes))
    tm = max(8, (tm // 8) * 8)
    tm = min(tm, _round_up(Mp, 8))           # don't tile past the data
    if Mp > 8:                               # >= 2 grid steps -> both v7x TCs
        tm = min(tm, _round_up(-(-Mp // 2), 8))
    tm = max(8, (tm // 8) * 8)
    grid = (pl.cdiv(Mp, tm),)

    est = resident + tm * row_bytes + 2 * 1024 * 1024   # + compiler slack
    vmem_limit = int(min(48 * 1024 * 1024, max(32 * 1024 * 1024, est)))

    kernel = functools.partial(_sine_encoding_kernel, kc=KC)

    def _resident_spec(shape, single_buffer):
        idx = lambda i: (0, 0)
        if single_buffer:
            # constant index_map -> no refill needed; drop the 2nd buffer.
            return pl.BlockSpec(shape, idx, pipeline_mode=pl.Buffered(1))
        return pl.BlockSpec(shape, idx)

    def _call(single_buffer_residents):
        return pl.pallas_call(
            kernel,
            out_shape=jax.ShapeDtypeStruct((Mp, KH), jnp.float32),
            grid_spec=pltpu.PrefetchScalarGridSpec(
                num_scalar_prefetch=0,
                grid=grid,
                in_specs=[
                    pl.BlockSpec((tm, KC), lambda i: (i, 0)),        # streamed
                    _resident_spec((2 * KC, KH), single_buffer_residents),
                    _resident_spec((KH, KH), single_buffer_residents),
                ],
                out_specs=pl.BlockSpec((tm, KH), lambda i: (i, 0)),
            ),
            compiler_params=pltpu.CompilerParams(
                dimension_semantics=("parallel",),
                vmem_limit_bytes=vmem_limit),
        )(e_pack, pw, wf_bd)

    try:
        out_pack = _call(True)
    except Exception:
        # pipeline_mode=pl.Buffered(1) not supported on this jax build:
        # fall back to default double-buffered resident operands.
        out_pack = _call(False)

    out = out_pack.reshape(Mp * k, H)
    if Mp * k != M:                        # only when B*N is not a multiple of k
        out = out[:M]
    return out.reshape(B, N, H)


def sine_encoding_reference(e, weight, bias, hidden_dim):
    """Pure-JAX mirror of the PyTorch forward (for verification)."""
    H = hidden_dim
    ee = e * 100.0
    div = jnp.exp(jnp.arange(0, H, 2, dtype=jnp.float32) *
                  (-math.log(10000.0) / H))
    pe = ee[..., None] * div                                   # (B, N, H/2)
    eeig = jnp.concatenate(
        [e[..., None], jnp.sin(pe), jnp.cos(pe)], axis=2)      # (B, N, H+1)
    return jnp.einsum("bnf,hf->bnh", eeig, weight,
                      precision=jax.lax.Precision.HIGHEST) + bias


if __name__ == "__main__":
    B, N, H = 4, 16, 32        # small shapes; H=32 exercises the lane packing

    key = jax.random.PRNGKey(0)
    k_e, k_w, k_b = jax.random.split(key, 3)

    e = jax.random.uniform(k_e, (B, N), dtype=jnp.float32,
                           minval=-1.0, maxval=1.0)
    bound = 1.0 / math.sqrt(H + 1)
    weight = jax.random.uniform(k_w, (H, H + 1), dtype=jnp.float32,
                                minval=-bound, maxval=bound)
    bias = jax.random.uniform(k_b, (H,), dtype=jnp.float32,
                              minval=-bound, maxval=bound)

    out = jax.block_until_ready(sine_encoding(e, weight, bias, H))
    ref = sine_encoding_reference(e, weight, bias, H)

    assert out.shape == (B, N, H)
    # tolerance covers MXU multi-pass f32 matmuls, sin range-reduction impl
    # differences, and cos-as-phase-shifted-sin ulp effects at |100*e*div|~100.
    err = float(jnp.max(jnp.abs(out - ref)))
    assert jnp.allclose(out, ref, atol=2e-4, rtol=2e-4), f"max abs err {err}"
    print("KERNEL_OK")
</pallas_src>

<mosaic_0001>
module attributes {stable_mosaic.version = 11 : i64} {
  func.func @_sine_encoding_kernel(%arg0: i32, %arg1: memref<8x8xf32, #tpu.memory_space<vmem>>, %arg2: memref<16x128xf32, #tpu.memory_space<vmem>>, %arg3: memref<128x128xf32, #tpu.memory_space<vmem>>, %arg4: memref<8x128xf32, #tpu.memory_space<vmem>>) attributes {dimension_semantics = [#tpu.dimension_semantics<parallel>], iteration_bounds = array<i64: 2>, scalar_prefetch = 0 : i64, scratch_operands = 0 : i64, tpu.core_type = #tpu.core_type<tc>, window_params = [{transform_indices = @transform_0, window_bounds = array<i64: 8, 8>}, {pipeline_mode = #tpu.pipeline_mode<synchronous>, transform_indices = @transform_1, window_bounds = array<i64: 16, 128>}, {pipeline_mode = #tpu.pipeline_mode<synchronous>, transform_indices = @transform_2, window_bounds = array<i64: 128, 128>}, {transform_indices = @transform_3, window_bounds = array<i64: 8, 128>}]} {
    %c0 = arith.constant 0 : index
    %c0_0 = arith.constant 0 : index
    %0 = vector.load %arg1[%c0, %c0_0] : memref<8x8xf32, #tpu.memory_space<vmem>>, vector<8x8xf32>
    %c0_1 = arith.constant 0 : index
    %c0_2 = arith.constant 0 : index
    %1 = vector.load %arg2[%c0_1, %c0_2] : memref<16x128xf32, #tpu.memory_space<vmem>>, vector<8x128xf32>
    %cst = arith.constant dense<0.000000e+00> : vector<8x128xf32>
    %2 = tpu.matmul %0, %1, %cst {dimension_numbers = #tpu.dot_dimension_numbers<[1], [0], [0], [1], [0, 0, 1, 1], [], []>} : vector<8x8xf32>, vector<8x128xf32>, vector<8x128xf32> -> vector<8x128xf32>
    %3 = math.sin %2 : vector<8x128xf32>
    %c0_3 = arith.constant 0 : index
    %c0_4 = arith.constant 0 : index
    %4 = vector.load %arg3[%c0_3, %c0_4] : memref<128x128xf32, #tpu.memory_space<vmem>>, vector<128x128xf32>
    %cst_5 = arith.constant dense<0.000000e+00> : vector<8x128xf32>
    %5 = tpu.matmul %3, %4, %cst_5 {dimension_numbers = #tpu.dot_dimension_numbers<[1], [0], [0], [1], [0, 0, 1, 1], [], []>} : vector<8x128xf32>, vector<128x128xf32>, vector<8x128xf32> -> vector<8x128xf32>
    %c8 = arith.constant 8 : index
    %c0_6 = arith.constant 0 : index
    %6 = vector.load %arg2[%c8, %c0_6] : memref<16x128xf32, #tpu.memory_space<vmem>>, vector<8x128xf32>
    %cst_7 = arith.constant dense<0.000000e+00> : vector<8x128xf32>
    %7 = tpu.matmul %0, %6, %cst_7 {dimension_numbers = #tpu.dot_dimension_numbers<[1], [0], [0], [1], [0, 0, 1, 1], [], []>} : vector<8x8xf32>, vector<8x128xf32>, vector<8x128xf32> -> vector<8x128xf32>
    %8 = arith.addf %5, %7 : vector<8x128xf32>
    %c0_8 = arith.constant 0 : index
    %c0_9 = arith.constant 0 : index
    %9 = vector.load %arg4[%c0_8, %c0_9] : memref<8x128xf32, #tpu.memory_space<vmem>>, vector<8x128xf32>
    tpu.vector_store %arg4[%c0_8, %c0_9], %8 {strides = array<i32>} : memref<8x128xf32, #tpu.memory_space<vmem>>, vector<8x128xf32>,
    return
  }
  func.func @transform_0(%arg0: i32) -> (i32, i32) {
    %c0_i32 = arith.constant 0 : i32
    %c0_i32_0 = arith.constant 0 : i32
    return %arg0, %c0_i32 : i32, i32
  }
  func.func @transform_1(%arg0: i32) -> (i32, i32) {
    %c0_i32 = arith.constant 0 : i32
    %c0_i32_0 = arith.constant 0 : i32
    %c0_i32_1 = arith.constant 0 : i32
    return %c0_i32, %c0_i32_0 : i32, i32
  }
  func.func @transform_2(%arg0: i32) -> (i32, i32) {
    %c0_i32 = arith.constant 0 : i32
    %c0_i32_0 = arith.constant 0 : i32
    %c0_i32_1 = arith.constant 0 : i32
    return %c0_i32, %c0_i32_0 : i32, i32
  }
  func.func @transform_3(%arg0: i32) -> (i32, i32) {
    %c0_i32 = arith.constant 0 : i32
    %c0_i32_0 = arith.constant 0 : i32
    return %arg0, %c0_i32 : i32, i32
  }
}

module attributes {stable_mosaic.version = 11 : i64} {
  func.func @_sine_encoding_kernel(%arg0: i32, %arg1: memref<8x8xf32, #tpu.memory_space<vmem>>, %arg2: memref<16x128xf32, #tpu.memory_space<vmem>>, %arg3: memref<128x128xf32, #tpu.memory_space<vmem>>, %arg4: memref<8x128xf32, #tpu.memory_space<vmem>>) attributes {dimension_semantics = [#tpu.dimension_semantics<parallel>], iteration_bounds = array<i64: 2>, scalar_prefetch = 0 : i64, scratch_operands = 0 : i64, tpu.core_type = #tpu.core_type<tc>, window_params = [{transform_indices = @transform_0, window_bounds = array<i64: 8, 8>}, {pipeline_mode = #tpu.pipeline_mode<synchronous>, transform_indices = @transform_1, window_bounds = array<i64: 16, 128>}, {pipeline_mode = #tpu.pipeline_mode<synchronous>, transform_indices = @transform_2, window_bounds = array<i64: 128, 128>}, {transform_indices = @transform_3, window_bounds = array<i64: 8, 128>}]} {
    %c0 = arith.constant 0 : index
    %c0_0 = arith.constant 0 : index
    %0 = vector.load %arg1[%c0, %c0_0] : memref<8x8xf32, #tpu.memory_space<vmem>>, vector<8x8xf32>
    %c0_1 = arith.constant 0 : index
    %c0_2 = arith.constant 0 : index
    %1 = vector.load %arg2[%c0_1, %c0_2] : memref<16x128xf32, #tpu.memory_space<vmem>>, vector<8x128xf32>
    %cst = arith.constant dense<0.000000e+00> : vector<8x128xf32>
    %2 = tpu.matmul %0, %1, %cst {dimension_numbers = #tpu.dot_dimension_numbers<[1], [0], [0], [1], [0, 0, 1, 1], [], []>} : vector<8x8xf32>, vector<8x128xf32>, vector<8x128xf32> -> vector<8x128xf32>
    %3 = math.sin %2 : vector<8x128xf32>
    %c0_3 = arith.constant 0 : index
    %c0_4 = arith.constant 0 : index
    %4 = vector.load %arg3[%c0_3, %c0_4] : memref<128x128xf32, #tpu.memory_space<vmem>>, vector<128x128xf32>
    %cst_5 = arith.constant dense<0.000000e+00> : vector<8x128xf32>
    %5 = tpu.matmul %3, %4, %cst_5 {dimension_numbers = #tpu.dot_dimension_numbers<[1], [0], [0], [1], [0, 0, 1, 1], [], []>} : vector<8x128xf32>, vector<128x128xf32>, vector<8x128xf32> -> vector<8x128xf32>
    %c8 = arith.constant 8 : index
    %c0_6 = arith.constant 0 : index
    %6 = vector.load %arg2[%c8, %c0_6] : memref<16x128xf32, #tpu.memory_space<vmem>>, vector<8x128xf32>
    %cst_7 = arith.constant dense<0.000000e+00> : vector<8x128xf32>
    %7 = tpu.matmul %0, %6, %cst_7 {dimension_numbers = #tpu.dot_dimension_numbers<[1], [0], [0], [1], [0, 0, 1, 1], [], []>} : vector<8x8xf32>, vector<8x128xf32>, vector<8x128xf32> -> vector<8x128xf32>
    %8 = arith.addf %5, %7 : vector<8x128xf32>
    %c0_8 = arith.constant 0 : index
    %c0_9 = arith.constant 0 : index
    %9 = vector.load %arg4[%c0_8, %c0_9] : memref<8x128xf32, #tpu.memory_space<vmem>>, vector<8x128xf32>
    tpu.vector_store %arg4[%c0_8, %c0_9], %8 {strides = array<i32>} : memref<8x128xf32, #tpu.memory_space<vmem>>, vector<8x128xf32>,
    return
  }
  func.func @transform_0(%arg0: i32) -> (i32, i32) {
    %c0_i32 = arith.constant 0 : i32
    %c0_i32_0 = arith.constant 0 : i32
    return %arg0, %c0_i32 : i32, i32
  }
  func.func @transform_1(%arg0: i32) -> (i32, i32) {
    %c0_i32 = arith.constant 0 : i32
    %c0_i32_0 = arith.constant 0 : i32
    %c0_i32_1 = arith.constant 0 : i32
    return %c0_i32, %c0_i32_0 : i32, i32
  }
  func.func @transform_2(%arg0: i32) -> (i32, i32) {
    %c0_i32 = arith.constant 0 : i32
    %c0_i32_0 = arith.constant 0 : i32
    %c0_i32_1 = arith.constant 0 : i32
    return %c0_i32, %c0_i32_0 : i32, i32
  }
  func.func @transform_3(%arg0: i32) -> (i32, i32) {
    %c0_i32 = arith.constant 0 : i32
    %c0_i32_0 = arith.constant 0 : i32
    return %arg0, %c0_i32 : i32, i32
  }
}

</mosaic_0001>

<bundles_post_ra>
// kernel: tpu_custom_call.1
= control target key start
LH: loop header
LB: loop body
LE: loop exit
PB: predicated region body
PF: predicated region fallthrough
CT: control target
= control target key end

     0   :  { %8 = vsyncpa [#allocation3], 0  ;;  %s1041_s0 = inlined_call_operand.vmem [shape: f32[16,8], index: 0, kind: input, shape index: {}]   ;;  %s1042_s1 = inlined_call_operand.vmem [shape: f32[16,128], index: 1, kind: input, shape index: {}]   ;;  %s1043_s2 = inlined_call_operand.hbm [shape: f32[128,128], index: 2, kind: input, shape index: {}]   ;;  %s1044_s3 = inlined_call_operand.hbm [shape: f32[16,128], index: 3, kind: output, shape index: {}]  }
   0x1   :  { %9 = vsyncpa [#allocation4], 0 }
   0x2   :  { %11 = vsyncpa [#allocation4 + $0x1], 0  ;;  %s880_s12 = smov 0   ;;  %s882_s13 = smov 0  }
   0x3   :  { %s884_s14 = smov 0   ;;  %s886_s15 = smov 0  }
   0x4 LB: > { %s901_s16 = sadd.s32 4294967295, %s846_s15   ;;  %s604_s17 = sadd.s32 4294967294, %s846_s15   ;;  %s846_s15 = sphi %s886_s15, %s1052_s15   ;;  %s842_s14 = sphi %s884_s14, %s1051_s14   ;;  %s838_s13 = sphi %s882_s13, %s1050_s13   ;;  %s834_s12 = sphi %s880_s12, %s1049_s12  }
   0x5   : > { %s905_s18 = sadd.s32 1, %s846_s15   ;;  %s92_s19 = sadd.s32 1, %s842_s14 }
   0x6   : > { %s89_s20 = ssub.s32 %s846_s15, %s905_s18  ;;  %p102_p0 = scmp.ne.s32.totalorder %s842_s14, %s838_s13 }
   0x7   : > { %p90_p1 = scmp.eq.s32.totalorder %s89_s20, 0  ;;  %p103_p2 = scmp.eq.s32.totalorder %s901_s16, 1 }
   0x8   : > { %p108_p3 = scmp.ne.s32.totalorder %s838_s13, %s834_s12  ;;  %p109_p4 = scmp.eq.s32.totalorder %s604_s17, 1 }
   0x9   : > { %s916_s21 = scalar_select %p90_p1, %s842_s14, %s92_s19  }
   0xa   : > { %p918_p5 = por %p103_p2, %p102_p0  ;;  %p922_p6 = por %p109_p4, %p108_p3 }
   0xb   : > { %p605_p7 = scmp.ge.s32.totalorder %s846_s15, 1  ;;  %p116_p8 = scmp.lt.s32.totalorder %s846_s15, 3 }
   0xc   : > { %s1046_s23 = scalar_select %p922_p6, 1, 0 }
   0xd   : > { %p706_p9 = scmp.eq.s32.totalorder %s901_s16, 0  ;;  %p929_p10 = pnand %p605_p7, %p116_p8 }
   0xe   : > { %s848_s25 = smov [#allocation2]  }
   0xf   : > { %s131_s26 = sshll.u32 %s848_s25, 4  ;;  %p698_p11 = pneg %p929_p10  ;;  %s132_s26 = int_to_ptr.vmem [resolvable:$true] %s131_s26 }
  0x10   : > { %s767_s27 = scalar_lea.vmem %s132_s26, 2048  ;;  %p775_p3 = scmp.lt.s32.totalorder %s132_s26, %s132_s26 }
  0x11   : > { %p699_p12 = pnand %p706_p9, %p698_p11  ;;  %p768_p0 = scmp.ne.s32.totalorder %s132_s26, %s767_s27 }
  0x12   : > { %p776_p4 = scmp.lt.s32.totalorder %s767_s27, %s767_s27 }
  0x13   : > { %p758_p13 = pneg %p699_p12 }
  0x14   : > { %p777_p6 = por %p776_p4, %p775_p3 }
  0x15   : > { %p770_p1 = pnand %p768_p0, %p758_p13 }
  0x17   : > { %p771_p2 = pneg %p770_p1 }
  0x19   : > { %p778_p7 = pnand %p777_p6, %p771_p2 }
  0x1b   : > { %781 = shalt.err (!%p778_p7)
}
  0x1c   : > { %s849_s28 = smov 128   ;;  %s850_s29 = smov 8  }
  0x1d   : > { %701 = dma.hbm_to_vmem [thread:$0]  (!%p699_p12), %s1043_s2, 2048, %s132_s26, [#allocation3], %s849_s28, %s849_s28, %s850_s29  }
  0x1e   : > { %154 = sbr.rel (%p929_p10) target bundleno = 526 (0x20e), region = 32 }
  0x23   : > { %825 = dma.done.wait (%p706_p9), [#allocation3], 2048  }
  0x24   : > { %827 = vsyncadd (%p706_p9), [#allocation3], 4294965248  ;;  %p177_p8 = scmp.lt.s32.totalorder %s901_s16, 1  ;;  %v851_v0 = vmov 0.0   ;;  %vm852_vm0 = vmmov 0   ;;  %vm183_vm1 = vcmask 64512  }
  0x25   : > { %643 = vmatprep.subr.mxu1 %v851_v0  ;;  %645 = vmatprep.mubr.msk.f32.mxu1 %vm852_vm0, %v851_v0  ;;  %v182_v1 = vld [vmem:[%s1042_s1] sm:$0xff]  ;;  %v376_v3 = vld [vmem:[#allocation2 + $0x78] sm:$0xff]  ;;  %v375_v4 = vld [vmem:[#allocation2 + $0x70] sm:$0xff]  ;;  %v853_v32 = vmov 683565275   ;;  %s174_s20 = sand.u32 1, %s838_s13  }
  0x26   : > { %s178_s5 = scalar_select %p177_p8, %s901_s16, 1  ;;  %653 = vmatprep.subr.mxu0 %v851_v0  ;;  %685 = vmatprep.mubr.msk.f32.mxu0 %vm852_vm0, %v851_v0  ;;  %v374_v5 = vld [vmem:[#allocation2 + $0x68] sm:$0xff]  ;;  %v373_v6 = vld [vmem:[#allocation2 + $0x60] sm:$0xff]  ;;  %v372_v7 = vld [vmem:[#allocation2 + $0x58] sm:$0xff]  ;;  %v854_v34 = vmov 2475754826  }
  0x27   : > { %644 = vmatpush3.msra.mxu1 %v182_v1  ;;  %654 = vmatpush3.msra.mxu0 %v376_v3  ;;  %v371_v8 = vld [vmem:[#allocation2 + $0x50] sm:$0xff]  ;;  %v370_v9 = vld [vmem:[#allocation2 + $0x48] sm:$0xff]  ;;  %v369_v10 = vld [vmem:[#allocation2 + $0x40] sm:$0xff]  ;;  %v855_v37 = vmov 2131351028   ;;  %s610_s24 = sshll.u32 %s174_s20, 3 }
  0x28   : > { %s611_s6 = sshll.u32 %s178_s5, 3  ;;  %648 = vmatprep.subr.mxu1 %v851_v0  ;;  %655 = vmatprep.subr.mxu0 %v851_v0  ;;  %v368_v11 = vld [vmem:[#allocation2 + $0x38] sm:$0xff]  ;;  %v377_v12 = vld [vmem:[%s1042_s1 + $0x8] sm:$0xff]  ;;  %v367_v13 = vld [vmem:[#allocation2 + $0x30] sm:$0xff]  ;;  %v856_v40 = vmov 2102212464  }
  0x29   : > { %s180_s9 = scalar_lea.vmem %s1041_s0, %s611_s6  ;;  %656 = vmatpush3.msra.mxu0 %v375_v4  ;;  %v366_v14 = vld [vmem:[#allocation2 + $0x28] sm:$0xff]  ;;  %v365_v15 = vld [vmem:[#allocation2 + $0x20] sm:$0xff]  ;;  %v364_v16 = vld [vmem:[#allocation2 + $0x18] sm:$0xff]  ;;  %v857_v43 = vmov 920167782   ;;  %s619_s25 = sshll.u32 %s901_s16, 7 }
  0x2a   : > { %v181_v2 = vld [vmem:[%s180_s9] sm:$0xff]  ;;  %657 = vmatprep.subr.mxu0 %v851_v0  ;;  %v363_v17 = vld [vmem:[#allocation2 + $0x10] sm:$0xff]  ;;  %v362_v18 = vld [vmem:[#allocation2 + $0x8] sm:$0xff]  ;;  %v858_v46 = vmov 1326507024   ;;  %s176_s26 = scalar_lea.vmem [#allocation5], %s610_s24  ;;  %s1006_s30 = scalar_lea.hbm %s1044_s3, %s619_s25 }
  0x2b   : > { %646 = vmatmul.mubr.msk.f32.vlgmr.msra.gmra.mxu1 %vm183_vm1, %v181_v2  ;;  %658 = vmatpush3.msra.mxu0 %v374_v5  ;;  %v361_v19 = vld [vmem:[#allocation2] sm:$0xff]  ;;  %s533_s27 = sshll.u32 %s176_s26, 4  ;;  %s520_s4 = scalar_lea.sflag [#allocation4], %s174_s20  ;;  %s534_s27 = int_to_ptr.vmem [resolvable:$true] %s533_s27 }
  0x2c   : > { %650 = vmatprep.mubr.msk.f32.mxu1 %vm852_vm0, %v851_v0  ;;  %659 = vmatprep.subr.mxu0 %v851_v0  ;;  %s782_s5 = scalar_lea.vmem %s534_s27, 128  ;;  %s859_s6 = smov [#allocation5]  }
  0x2d   : > { %660 = vmatpush3.msra.mxu0 %v373_v6  ;;  %649 = vmatpush3.msra.mxu1 %v377_v12  ;;  %p783_p6 = scmp.ne.s32.totalorder %s534_s27, %s782_s5  ;;  %s786_s16 = sshll.u32 %s859_s6, 4  ;;  %s787_s16 = int_to_ptr.vmem [resolvable:$false] %s786_s16 }
  0x2e   : > { %661 = vmatprep.subr.mxu0 %v851_v0  ;;  %s788_s7 = scalar_lea.vmem %s787_s16, 256  ;;  %p789_p11 = scmp.lt.s32.totalorder %s534_s27, %s787_s16 }
  0x2f   : > { %662 = vmatpush3.msra.mxu0 %v372_v7  ;;  %651 = vmatmul.mubr.msk.f32.vlgmr.msra.gmra.mxu1 %vm183_vm1, %v181_v2  ;;  %p784_p9 = pnand %p783_p6, %p918_p5  ;;  %p790_p12 = scmp.lt.s32.totalorder %s788_s7, %s782_s5 }
  0x30   : > { %663 = vmatprep.subr.mxu0 %v851_v0 }
  0x31   : > { %664 = vmatpush3.msra.mxu0 %v371_v8  ;;  %p785_p10 = pneg %p784_p9  ;;  %p791_p13 = por %p790_p12, %p789_p11 }
  0x32   : > { %665 = vmatprep.subr.mxu0 %v851_v0 }
  0x33   : > { %666 = vmatpush3.msra.mxu0 %v370_v9  ;;  %p792_p0 = pnand %p791_p13, %p785_p10 }
  0x34   : > { %667 = vmatprep.subr.mxu0 %v851_v0 }
  0x35   : > { %668 = vmatpush3.msra.mxu0 %v369_v10 }
  0x36   : > { %669 = vmatprep.subr.mxu0 %v851_v0 }
  0x37   : > { %670 = vmatpush3.msra.mxu0 %v368_v11 }
  0x38   : > { %671 = vmatprep.subr.mxu0 %v851_v0 }
  0x39   : > { %672 = vmatpush3.msra.mxu0 %v367_v13 }
  0x3a   : > { %673 = vmatprep.subr.mxu0 %v851_v0 }
  0x3b   : > { %674 = vmatpush3.msra.mxu0 %v366_v14 }
  0x3c   : > { %675 = vmatprep.subr.mxu0 %v851_v0 }
  0x3d   : > { %676 = vmatpush3.msra.mxu0 %v365_v15 }
  0x3e   : > { %677 = vmatprep.subr.mxu0 %v851_v0 }
  0x3f   : > { %678 = vmatpush3.msra.mxu0 %v364_v16 }
  0x40   : > { %679 = vmatprep.subr.mxu0 %v851_v0 }
  0x41   : > { %680 = vmatpush3.msra.mxu0 %v363_v17 }
  0x42   : > { %681 = vmatprep.subr.mxu0 %v851_v0 }
  0x43   : > { %682 = vmatpush3.msra.mxu0 %v362_v18 }
  0x44   : > { %683 = vmatprep.subr.mxu0 %v851_v0 }
  0x45   : > { %684 = vmatpush3.msra.mxu0 %v361_v19 }
  0xeb   : > { %v980_v20 = vpop.f32.mrf.mxu1 }
  0xec   : > { %v260_v21 = vand.u32 2139095040, %v980_v20  ;;  %v257_v26 = vand.u32 2147483647, %v980_v20  ;;  %vm259_vm9 = vcmp.lt.s32.totalorder %v980_v20, 0  ;;  %vm349_vm14 = vweird.f32 %v980_v20 }
  0xed   : > { %v647_v22 = vpop.f32.mrf.mxu1 }
  0xee   : > { %v261_v23 = vshrl.u32 %v260_v21, 23  ;;  %v264_v29 = vand.u32 8388607, %v257_v26  ;;  %vm258_vm10 = vcmp.le.f32.partialorder %v257_v26, 0.7853982 }
  0xf0   : > { %v613_v24 = vadd.s32 4294967169, %v261_v23  ;;  %v265_v48 = vor.u32 8388608, %v264_v29 }
  0xf2   : > { %v267_v25 = vadd.s32 1, %v613_v24  ;;  %v305_v62 = vshll.u32 %v265_v48, 8 }
  0xf4   : > { %vm268_vm2 = vcmp.gt.s32.totalorder %v267_v25, 0 }
  0xf5   : > { %v269_v27 = vsel %vm268_vm2, %v267_v25, 0 }
  0xf6   : > { %v271_v28 = vand.u32 31, %v269_v27  ;;  %v270_v31 = vshrl.u32 %v269_v27, 5 }
  0xf8   : > { %v272_v30 = vsub.s32 32, %v271_v28  ;;  %v274_v33 = vshll.u32 %v853_v32, %v271_v28  ;;  %v277_v35 = vshll.u32 %v854_v34, %v271_v28  ;;  %v280_v39 = vshll.u32 %v855_v37, %v271_v28 }
  0xf9   : > { %v283_v42 = vshll.u32 %v856_v40, %v271_v28  ;;  %v286_v45 = vshll.u32 %v857_v43, %v271_v28  ;;  %vm289_vm3 = vcmp.lt.s32.totalorder %v270_v31, 1  ;;  %vm292_vm4 = vcmp.lt.s32.totalorder %v270_v31, 4 }
  0xfa   : > { %v275_v36 = vshrl.u32 %v854_v34, %v272_v30  ;;  %v278_v38 = vshrl.u32 %v855_v37, %v272_v30  ;;  %v281_v41 = vshrl.u32 %v856_v40, %v272_v30  ;;  %v284_v44 = vshrl.u32 %v857_v43, %v272_v30 }
  0xfb   : > { %v287_v47 = vshrl.u32 %v858_v46, %v272_v30  ;;  %v273_v57 = vshrl.u32 %v853_v32, %v272_v30  ;;  %vm291_vm5 = vcmp.lt.s32.totalorder %v270_v31, 3  ;;  %vm290_vm6 = vcmp.lt.s32.totalorder %v270_v31, 2 }
  0xfc   : > { %v276_v49 = vor.u32 %v275_v36, %v274_v33  ;;  %v279_v50 = vor.u32 %v278_v38, %v277_v35  ;;  %v282_v51 = vor.u32 %v281_v41, %v280_v39  ;;  %v285_v52 = vor.u32 %v284_v44, %v283_v42 }
  0xfd   : > { %v288_v53 = vor.u32 %v287_v47, %v286_v45 }
  0xfe   : > { %v294_v54 = vsel %vm292_vm4, %v282_v51, 2102212464  ;;  %v297_v55 = vsel %vm289_vm3, %v276_v49, %v279_v50  ;;  %v301_v56 = vsel %vm289_vm3, %v279_v50, %v282_v51  ;;  %v298_v58 = vsel %vm292_vm4, %v285_v52, 920167782 }
  0xff   : > { %v302_v59 = vsel %vm292_vm4, %v288_v53, 1326507024  ;;  %v299_v60 = vsel %vm291_vm5, %v282_v51, %v298_v58  ;;  %v293_v63 = vsel %vm289_vm3, %v273_v57, %v276_v49  ;;  %v295_v0 = vsel %vm291_vm5, %v279_v50, %v294_v54  ;;  %v444_v50 = vpop.f32.mrf.mxu1 }
 0x100   : > { %v303_v61 = vsel %vm291_vm5, %v285_v52, %v302_v59  ;;  %v300_v1 = vsel %vm290_vm6, %v297_v55, %v299_v60  ;;  %v296_v7 = vsel %vm290_vm6, %v293_v63, %v295_v0 }
 0x101   : > { %v304_v2 = vsel %vm290_vm6, %v301_v56, %v303_v61  ;;  %v989_v5 = vmul.u32.u64.low %v305_v62, %v300_v1  ;;  %v990_v6 = vmul.u32.u64.high %v305_v62, %v300_v1, %v989_v5  ;;  %v312_v9 = vmul.u32 %v305_v62, %v296_v7  ;;  %v652_v51 = vpop.f32.mrf.mxu1 }
 0x102   : > { %v986_v3 = vmul.u32.u64.low %v305_v62, %v304_v2  ;;  %v987_v4 = vmul.u32.u64.high %v305_v62, %v304_v2, %v986_v3 }
 0x103   : > { %v315_v8 = vadd.s32 1, %v990_v6 }
 0x104   : > { %vm314_vm7 = vc.u32 %v987_v4, %v989_v5  ;;  %v313_v22 = vadd.s32 %v989_v5, %v987_v4 }
 0x105   : > { %v316_v10 = vsel %vm314_vm7, %v315_v8, %v990_v6 }
 0x106   : > { %v317_v11 = vadd.s32 %v316_v10, %v312_v9 }
 0x108   : > { %v318_v12 = vadd.s32 536870912, %v317_v11 }
 0x10a   : > { %v319_v13 = vshrl.u32 %v318_v12, 30 }
 0x10c   : > { %v320_v14 = vshll.u32 %v319_v13, 30  ;;  %v343_v36 = vsub.s32 4, %v319_v13 }
 0x10e   : > { %v321_v15 = vsub.s32 %v317_v11, %v320_v14  ;;  %v344_v39 = vsel %vm259_vm9, %v343_v36, %v319_v13 }
 0x10f   : > { %v346_v40 = vsel %vm258_vm10, 0, %v344_v39 }
 0x110   : > { %v323_v16 = vsub.s32 0, %v321_v15  ;;  %v350_v41 = vadd.s32 3, %v346_v40 }
 0x112   : > { %v614_v17 = vmin.u32 %v323_v16, %v321_v15  ;;  %v351_v42 = vand.u32 3, %v350_v41 }
 0x114   : > { %v325_v18 = vclz %v614_v17  ;;  %vm356_vm11 = vcmp.eq.s32.totalorder %v351_v42, 2  ;;  %vm353_vm12 = vcmp.eq.s32.totalorder %v351_v42, 0  ;;  %vm352_vm13 = vcmp.lt.s32.totalorder %v351_v42, 2 }
 0x116   : > { %v615_v19 = vadd.s32 4294967294, %v325_v18 }
 0x118   : > { %vm616_vm8 = vcmp.lt.s32.totalorder %v615_v19, 0 }
 0x119   : > { %v328_v21 = vsel %vm616_vm8, 0, %v615_v19 }
 0x11a   : > { %v329_v23 = vsub.s32 32, %v328_v21  ;;  %v333_v24 = vsub.s32 4294967266, %v328_v21  ;;  %v330_v25 = vshll.u32 %v321_v15, %v328_v21 }
 0x11c   : > { %v331_v27 = vshrl.u32 %v313_v22, %v329_v23  ;;  %v334_v28 = vadd.s32 127, %v333_v24 }
 0x11e   : > { %v332_v29 = vor.u32 %v331_v27, %v330_v25  ;;  %v335_v30 = vshll.u32 %v334_v28, 23 }
 0x120   : > { %v336_v31 = vor.u32 4788187, %v335_v30  ;;  %v339_v33 = vcvt.s32.f32 %v332_v29 }
 0x122   : > { %v337_v32 = vand.u32 2147483647, %v336_v31 }
 0x124   : > { %v340_v34 = vmul.f32 %v339_v33, %v337_v32 }
 0x126   : > { %v341_v35 = vxor.u32 2147483648, %v340_v34 }
 0x128   : > { %v342_v37 = vsel %vm259_vm9, %v341_v35, %v340_v34 }
 0x129   : > { %v345_v38 = vsel %vm258_vm10, %v980_v20, %v342_v37 }
 0x12a   : > { %752 = vcosq.f32 %v345_v38 }
 0x12b   : > { %754 = vsinq.f32 %v345_v38 }
 0x137   : > { %v753_v43 = vpop.eup %752 }
 0x138   : > { %v755_v44 = vpop.eup %754  ;;  %v357_v45 = vxor.u32 2147483648, %v753_v43 }
 0x139   : > { %v354_v46 = vxor.u32 2147483648, %v755_v44 }
 0x13a   : > { %v358_v47 = vsel %vm356_vm11, %v357_v45, %v755_v44 }
 0x13b   : > { %v355_v26 = vsel %vm353_vm12, %v753_v43, %v354_v46 }
 0x13c   : > { %v359_v48 = vsel %vm352_vm13, %v355_v26, %v358_v47 }
 0x13d   : > { %v360_v49 = vsel %vm349_vm14, nan, %v359_v48 }
 0x13e   : > { %686 = vmatmul.mubr.f32.vlgmr.msra.gmra.mxu0 %v360_v49 }
 0x1fe   : > { %v514_v52 = vpop.f32.mrf.mxu0 }
 0x1ff   : > { %v515_v53 = vadd.f32 %v514_v52, %v444_v50 }
 0x200   : > { %v687_v20 = vpop.f32.mrf.mxu0 }
 0x201   : > { %518 = vst [vmem:[%s176_s26] sm:$0xff] %v515_v53 }
 0x202   : > { %795 = shalt.err (!%p792_p0)
}
 0x203   : > { %s796_s8 = scalar_lea.hbm %s1006_s30, 128  ;;  %s800_s11 = scalar_lea.hbm %s1044_s3, 256 }
 0x204   : > { %p797_p1 = scmp.ne.s32.totalorder %s1006_s30, %s796_s8  ;;  %p801_p4 = scmp.lt.s32.totalorder %s1006_s30, %s1044_s3 }
 0x205   : > { %p802_p7 = scmp.lt.s32.totalorder %s800_s11, %s796_s8 }
 0x206   : > { %p798_p2 = pnand %p797_p1, %p918_p5 }
 0x207   : > { %p803_p8 = por %p802_p7, %p801_p4 }
 0x208   : > { %p799_p3 = pneg %p798_p2 }
 0x20a   : > { %p804_p6 = pnand %p803_p8, %p799_p3 }
 0x20c   : > { %807 = shalt.err (!%p804_p6)
}
 0x20d   : > { %696 = dma.vmem_to_hbm [thread:$0]  (%p918_p5), %s534_s27, 128, %s1006_s30, %s520_s4  }
 0x20e PF: > { %p708_p9 = scmp.ge.s32.totalorder %s846_s15, 2  ;;  %s545_s20 = sand.u32 1, %s834_s12  }
 0x20f   : > { %p1048_p10 = scmp.ne.s32.totalorder %s1046_s23, 0  ;;  %s546_s24 = scalar_lea.sflag [#allocation4], %s545_s20 }
 0x211   : > { %p703_p11 = pnand %p708_p9, %p1048_p10 }
 0x213   : > { %p704_p12 = pneg %p703_p11 }
 0x215   : > { %829 = dma.done.wait (%p704_p12), %s546_s24, 128  }
 0x216   : > { %831 = vsyncadd (%p704_p12), %s546_s24, 4294967168  ;;  %p14_p13 = scmp.ge.s32.totalorder %s905_s18, 4   ;;  %s1049_s12 = smov %s838_s13 }
 0x217   : > { %s1050_s13 = smov %s842_s14  ;;  %s1051_s14 = smov %s916_s21 }
 0x218   : > { %s1052_s15 = smov %s905_s18  ;;  %16 = sbr.rel (!%p14_p13) target bundleno = 4 (0x4), region = 72 }
 0x21d   :  { %551 = vsyncpa [#allocation3], 1 }
 0x21e   :  { %553 = vsyncpa [#allocation3 + $0x1], 1 }
 0x21f   :  { %554 = vsyncpa [#allocation4], 1 }
 0x220   :  { %556 = vsyncpa [#allocation4 + $0x1], 1 }

// kernel: tpu_custom_call.1
= control target key start
LH: loop header
LB: loop body
LE: loop exit
PB: predicated region body
PF: predicated region fallthrough
CT: control target
= control target key end

     0   :  { %8 = vsyncpa [#allocation3], 0  ;;  %s1041_s0 = inlined_call_operand.vmem [shape: f32[16,8], index: 0, kind: input, shape index: {}]   ;;  %s1042_s1 = inlined_call_operand.vmem [shape: f32[16,128], index: 1, kind: input, shape index: {}]   ;;  %s1043_s2 = inlined_call_operand.hbm [shape: f32[128,128], index: 2, kind: input, shape index: {}]   ;;  %s1044_s3 = inlined_call_operand.hbm [shape: f32[16,128], index: 3, kind: output, shape index: {}]  }
   0x1   :  { %9 = vsyncpa [#allocation4], 0 }
   0x2   :  { %11 = vsyncpa [#allocation4 + $0x1], 0  ;;  %s880_s12 = smov 0   ;;  %s882_s13 = smov 0  }
   0x3   :  { %s884_s14 = smov 0   ;;  %s886_s15 = smov 0  }
   0x4 LB: > { %s901_s16 = sadd.s32 4294967295, %s846_s15   ;;  %s604_s17 = sadd.s32 4294967294, %s846_s15   ;;  %s846_s15 = sphi %s886_s15, %s1052_s15   ;;  %s842_s14 = sphi %s884_s14, %s1051_s14   ;;  %s838_s13 = sphi %s882_s13, %s1050_s13   ;;  %s834_s12 = sphi %s880_s12, %s1049_s12  }
   0x5   : > { %s905_s18 = sadd.s32 1, %s846_s15   ;;  %s92_s19 = sadd.s32 1, %s842_s14 }
   0x6   : > { %s89_s20 = ssub.s32 %s846_s15, %s905_s18  ;;  %p102_p0 = scmp.ne.s32.totalorder %s842_s14, %s838_s13 }
   0x7   : > { %p90_p1 = scmp.eq.s32.totalorder %s89_s20, 0  ;;  %p103_p2 = scmp.eq.s32.totalorder %s901_s16, 1 }
   0x8   : > { %p108_p3 = scmp.ne.s32.totalorder %s838_s13, %s834_s12  ;;  %p109_p4 = scmp.eq.s32.totalorder %s604_s17, 1 }
   0x9   : > { %s916_s21 = scalar_select %p90_p1, %s842_s14, %s92_s19  }
   0xa   : > { %p918_p5 = por %p103_p2, %p102_p0  ;;  %p922_p6 = por %p109_p4, %p108_p3 }
   0xb   : > { %p605_p7 = scmp.ge.s32.totalorder %s846_s15, 1  ;;  %p116_p8 = scmp.lt.s32.totalorder %s846_s15, 3 }
   0xc   : > { %s1046_s23 = scalar_select %p922_p6, 1, 0 }
   0xd   : > { %p706_p9 = scmp.eq.s32.totalorder %s901_s16, 0  ;;  %p929_p10 = pnand %p605_p7, %p116_p8 }
   0xe   : > { %s848_s25 = smov [#allocation2]  }
   0xf   : > { %s131_s26 = sshll.u32 %s848_s25, 4  ;;  %p698_p11 = pneg %p929_p10  ;;  %s132_s26 = int_to_ptr.vmem [resolvable:$true] %s131_s26 }
  0x10   : > { %s767_s27 = scalar_lea.vmem %s132_s26, 2048  ;;  %p775_p3 = scmp.lt.s32.totalorder %s132_s26, %s132_s26 }
  0x11   : > { %p699_p12 = pnand %p706_p9, %p698_p11  ;;  %p768_p0 = scmp.ne.s32.totalorder %s132_s26, %s767_s27 }
  0x12   : > { %p776_p4 = scmp.lt.s32.totalorder %s767_s27, %s767_s27 }
  0x13   : > { %p758_p13 = pneg %p699_p12 }
  0x14   : > { %p777_p6 = por %p776_p4, %p775_p3 }
  0x15   : > { %p770_p1 = pnand %p768_p0, %p758_p13 }
  0x17   : > { %p771_p2 = pneg %p770_p1 }
  0x19   : > { %p778_p7 = pnand %p777_p6, %p771_p2 }
  0x1b   : > { %781 = shalt.err (!%p778_p7)
}
  0x1c   : > { %s849_s28 = smov 128   ;;  %s850_s29 = smov 8  }
  0x1d   : > { %701 = dma.hbm_to_vmem [thread:$0]  (!%p699_p12), %s1043_s2, 2048, %s132_s26, [#allocation3], %s849_s28, %s849_s28, %s850_s29  }
  0x1e   : > { %154 = sbr.rel (%p929_p10) target bundleno = 526 (0x20e), region = 32 }
  0x23   : > { %825 = dma.done.wait (%p706_p9), [#allocation3], 2048  }
  0x24   : > { %827 = vsyncadd (%p706_p9), [#allocation3], 4294965248  ;;  %p177_p8 = scmp.lt.s32.totalorder %s901_s16, 1  ;;  %v851_v0 = vmov 0.0   ;;  %vm852_vm0 = vmmov 0   ;;  %vm183_vm1 = vcmask 64512  }
  0x25   : > { %643 = vmatprep.subr.mxu1 %v851_v0  ;;  %645 = vmatprep.mubr.msk.f32.mxu1 %vm852_vm0, %v851_v0  ;;  %v182_v1 = vld [vmem:[%s1042_s1] sm:$0xff]  ;;  %v376_v3 = vld [vmem:[#allocation2 + $0x78] sm:$0xff]  ;;  %v375_v4 = vld [vmem:[#allocation2 + $0x70] sm:$0xff]  ;;  %v853_v32 = vmov 683565275   ;;  %s174_s20 = sand.u32 1, %s838_s13  }
  0x26   : > { %s178_s5 = scalar_select %p177_p8, %s901_s16, 1  ;;  %653 = vmatprep.subr.mxu0 %v851_v0  ;;  %685 = vmatprep.mubr.msk.f32.mxu0 %vm852_vm0, %v851_v0  ;;  %v374_v5 = vld [vmem:[#allocation2 + $0x68] sm:$0xff]  ;;  %v373_v6 = vld [vmem:[#allocation2 + $0x60] sm:$0xff]  ;;  %v372_v7 = vld [vmem:[#allocation2 + $0x58] sm:$0xff]  ;;  %v854_v34 = vmov 2475754826  }
  0x27   : > { %644 = vmatpush3.msra.mxu1 %v182_v1  ;;  %654 = vmatpush3.msra.mxu0 %v376_v3  ;;  %v371_v8 = vld [vmem:[#allocation2 + $0x50] sm:$0xff]  ;;  %v370_v9 = vld [vmem:[#allocation2 + $0x48] sm:$0xff]  ;;  %v369_v10 = vld [vmem:[#allocation2 + $0x40] sm:$0xff]  ;;  %v855_v37 = vmov 2131351028   ;;  %s610_s24 = sshll.u32 %s174_s20, 3 }
  0x28   : > { %s611_s6 = sshll.u32 %s178_s5, 3  ;;  %648 = vmatprep.subr.mxu1 %v851_v0  ;;  %655 = vmatprep.subr.mxu0 %v851_v0  ;;  %v368_v11 = vld [vmem:[#allocation2 + $0x38] sm:$0xff]  ;;  %v377_v12 = vld [vmem:[%s1042_s1 + $0x8] sm:$0xff]  ;;  %v367_v13 = vld [vmem:[#allocation2 + $0x30] sm:$0xff]  ;;  %v856_v40 = vmov 2102212464  }
  0x29   : > { %s180_s9 = scalar_lea.vmem %s1041_s0, %s611_s6  ;;  %656 = vmatpush3.msra.mxu0 %v375_v4  ;;  %v366_v14 = vld [vmem:[#allocation2 + $0x28] sm:$0xff]  ;;  %v365_v15 = vld [vmem:[#allocation2 + $0x20] sm:$0xff]  ;;  %v364_v16 = vld [vmem:[#allocation2 + $0x18] sm:$0xff]  ;;  %v857_v43 = vmov 920167782   ;;  %s619_s25 = sshll.u32 %s901_s16, 7 }
  0x2a   : > { %v181_v2 = vld [vmem:[%s180_s9] sm:$0xff]  ;;  %657 = vmatprep.subr.mxu0 %v851_v0  ;;  %v363_v17 = vld [vmem:[#allocation2 + $0x10] sm:$0xff]  ;;  %v362_v18 = vld [vmem:[#allocation2 + $0x8] sm:$0xff]  ;;  %v858_v46 = vmov 1326507024   ;;  %s176_s26 = scalar_lea.vmem [#allocation5], %s610_s24  ;;  %s1006_s30 = scalar_lea.hbm %s1044_s3, %s619_s25 }
  0x2b   : > { %646 = vmatmul.mubr.msk.f32.vlgmr.msra.gmra.mxu1 %vm183_vm1, %v181_v2  ;;  %658 = vmatpush3.msra.mxu0 %v374_v5  ;;  %v361_v19 = vld [vmem:[#allocation2] sm:$0xff]  ;;  %s533_s27 = sshll.u32 %s176_s26, 4  ;;  %s520_s4 = scalar_lea.sflag [#allocation4], %s174_s20  ;;  %s534_s27 = int_to_ptr.vmem [resolvable:$true] %s533_s27 }
  0x2c   : > { %650 = vmatprep.mubr.msk.f32.mxu1 %vm852_vm0, %v851_v0  ;;  %659 = vmatprep.subr.mxu0 %v851_v0  ;;  %s782_s5 = scalar_lea.vmem %s534_s27, 128  ;;  %s859_s6 = smov [#allocation5]  }
  0x2d   : > { %660 = vmatpush3.msra.mxu0 %v373_v6  ;;  %649 = vmatpush3.msra.mxu1 %v377_v12  ;;  %p783_p6 = scmp.ne.s32.totalorder %s534_s27, %s782_s5  ;;  %s786_s16 = sshll.u32 %s859_s6, 4  ;;  %s787_s16 = int_to_ptr.vmem [resolvable:$false] %s786_s16 }
  0x2e   : > { %661 = vmatprep.subr.mxu0 %v851_v0  ;;  %s788_s7 = scalar_lea.vmem %s787_s16, 256  ;;  %p789_p11 = scmp.lt.s32.totalorder %s534_s27, %s787_s16 }
  0x2f   : > { %662 = vmatpush3.msra.mxu0 %v372_v7  ;;  %651 = vmatmul.mubr.msk.f32.vlgmr.msra.gmra.mxu1 %vm183_vm1, %v181_v2  ;;  %p784_p9 = pnand %p783_p6, %p918_p5  ;;  %p790_p12 = scmp.lt.s32.totalorder %s788_s7, %s782_s5 }
  0x30   : > { %663 = vmatprep.subr.mxu0 %v851_v0 }
  0x31   : > { %664 = vmatpush3.msra.mxu0 %v371_v8  ;;  %p785_p10 = pneg %p784_p9  ;;  %p791_p13 = por %p790_p12, %p789_p11 }
  0x32   : > { %665 = vmatprep.subr.mxu0 %v851_v0 }
  0x33   : > { %666 = vmatpush3.msra.mxu0 %v370_v9  ;;  %p792_p0 = pnand %p791_p13, %p785_p10 }
  0x34   : > { %667 = vmatprep.subr.mxu0 %v851_v0 }
  0x35   : > { %668 = vmatpush3.msra.mxu0 %v369_v10 }
  0x36   : > { %669 = vmatprep.subr.mxu0 %v851_v0 }
  0x37   : > { %670 = vmatpush3.msra.mxu0 %v368_v11 }
  0x38   : > { %671 = vmatprep.subr.mxu0 %v851_v0 }
  0x39   : > { %672 = vmatpush3.msra.mxu0 %v367_v13 }
  0x3a   : > { %673 = vmatprep.subr.mxu0 %v851_v0 }
  0x3b   : > { %674 = vmatpush3.msra.mxu0 %v366_v14 }
  0x3c   : > { %675 = vmatprep.subr.mxu0 %v851_v0 }
  0x3d   : > { %676 = vmatpush3.msra.mxu0 %v365_v15 }
  0x3e   : > { %677 = vmatprep.subr.mxu0 %v851_v0 }
  0x3f   : > { %678 = vmatpush3.msra.mxu0 %v364_v16 }
  0x40   : > { %679 = vmatprep.subr.mxu0 %v851_v0 }
  0x41   : > { %680 = vmatpush3.msra.mxu0 %v363_v17 }
  0x42   : > { %681 = vmatprep.subr.mxu0 %v851_v0 }
  0x43   : > { %682 = vmatpush3.msra.mxu0 %v362_v18 }
  0x44   : > { %683 = vmatprep.subr.mxu0 %v851_v0 }
  0x45   : > { %684 = vmatpush3.msra.mxu0 %v361_v19 }
  0xeb   : > { %v980_v20 = vpop.f32.mrf.mxu1 }
  0xec   : > { %v260_v21 = vand.u32 2139095040, %v980_v20  ;;  %v257_v26 = vand.u32 2147483647, %v980_v20  ;;  %vm259_vm9 = vcmp.lt.s32.totalorder %v980_v20, 0  ;;  %vm349_vm14 = vweird.f32 %v980_v20 }
  0xed   : > { %v647_v22 = vpop.f32.mrf.mxu1 }
  0xee   : > { %v261_v23 = vshrl.u32 %v260_v21, 23  ;;  %v264_v29 = vand.u32 8388607, %v257_v26  ;;  %vm258_vm10 = vcmp.le.f32.partialorder %v257_v26, 0.7853982 }
  0xf0   : > { %v613_v24 = vadd.s32 4294967169, %v261_v23  ;;  %v265_v48 = vor.u32 8388608, %v264_v29 }
  0xf2   : > { %v267_v25 = vadd.s32 1, %v613_v24  ;;  %v305_v62 = vshll.u32 %v265_v48, 8 }
  0xf4   : > { %vm268_vm2 = vcmp.gt.s32.totalorder %v267_v25, 0 }
  0xf5   : > { %v269_v27 = vsel %vm268_vm2, %v267_v25, 0 }
  0xf6   : > { %v271_v28 = vand.u32 31, %v269_v27  ;;  %v270_v31 = vshrl.u32 %v269_v27, 5 }
  0xf8   : > { %v272_v30 = vsub.s32 32, %v271_v28  ;;  %v274_v33 = vshll.u32 %v853_v32, %v271_v28  ;;  %v277_v35 = vshll.u32 %v854_v34, %v271_v28  ;;  %v280_v39 = vshll.u32 %v855_v37, %v271_v28 }
  0xf9   : > { %v283_v42 = vshll.u32 %v856_v40, %v271_v28  ;;  %v286_v45 = vshll.u32 %v857_v43, %v271_v28  ;;  %vm289_vm3 = vcmp.lt.s32.totalorder %v270_v31, 1  ;;  %vm292_vm4 = vcmp.lt.s32.totalorder %v270_v31, 4 }
  0xfa   : > { %v275_v36 = vshrl.u32 %v854_v34, %v272_v30  ;;  %v278_v38 = vshrl.u32 %v855_v37, %v272_v30  ;;  %v281_v41 = vshrl.u32 %v856_v40, %v272_v30  ;;  %v284_v44 = vshrl.u32 %v857_v43, %v272_v30 }
  0xfb   : > { %v287_v47 = vshrl.u32 %v858_v46, %v272_v30  ;;  %v273_v57 = vshrl.u32 %v853_v32, %v272_v30  ;;  %vm291_vm5 = vcmp.lt.s32.totalorder %v270_v31, 3  ;;  %vm290_vm6 = vcmp.lt.s32.totalorder %v270_v31, 2 }
  0xfc   : > { %v276_v49 = vor.u32 %v275_v36, %v274_v33  ;;  %v279_v50 = vor.u32 %v278_v38, %v277_v35  ;;  %v282_v51 = vor.u32 %v281_v41, %v280_v39  ;;  %v285_v52 = vor.u32 %v284_v44, %v283_v42 }
  0xfd   : > { %v288_v53 = vor.u32 %v287_v47, %v286_v45 }
  0xfe   : > { %v294_v54 = vsel %vm292_vm4, %v282_v51, 2102212464  ;;  %v297_v55 = vsel %vm289_vm3, %v276_v49, %v279_v50  ;;  %v301_v56 = vsel %vm289_vm3, %v279_v50, %v282_v51  ;;  %v298_v58 = vsel %vm292_vm4, %v285_v52, 920167782 }
  0xff   : > { %v302_v59 = vsel %vm292_vm4, %v288_v53, 1326507024  ;;  %v299_v60 = vsel %vm291_vm5, %v282_v51, %v298_v58  ;;  %v293_v63 = vsel %vm289_vm3, %v273_v57, %v276_v49  ;;  %v295_v0 = vsel %vm291_vm5, %v279_v50, %v294_v54  ;;  %v444_v50 = vpop.f32.mrf.mxu1 }
 0x100   : > { %v303_v61 = vsel %vm291_vm5, %v285_v52, %v302_v59  ;;  %v300_v1 = vsel %vm290_vm6, %v297_v55, %v299_v60  ;;  %v296_v7 = vsel %vm290_vm6, %v293_v63, %v295_v0 }
 0x101   : > { %v304_v2 = vsel %vm290_vm6, %v301_v56, %v303_v61  ;;  %v989_v5 = vmul.u32.u64.low %v305_v62, %v300_v1  ;;  %v990_v6 = vmul.u32.u64.high %v305_v62, %v300_v1, %v989_v5  ;;  %v312_v9 = vmul.u32 %v305_v62, %v296_v7  ;;  %v652_v51 = vpop.f32.mrf.mxu1 }
 0x102   : > { %v986_v3 = vmul.u32.u64.low %v305_v62, %v304_v2  ;;  %v987_v4 = vmul.u32.u64.high %v305_v62, %v304_v2, %v986_v3 }
 0x103   : > { %v315_v8 = vadd.s32 1, %v990_v6 }
 0x104   : > { %vm314_vm7 = vc.u32 %v987_v4, %v989_v5  ;;  %v313_v22 = vadd.s32 %v989_v5, %v987_v4 }
 0x105   : > { %v316_v10 = vsel %vm314_vm7, %v315_v8, %v990_v6 }
 0x106   : > { %v317_v11 = vadd.s32 %v316_v10, %v312_v9 }
 0x108   : > { %v318_v12 = vadd.s32 536870912, %v317_v11 }
 0x10a   : > { %v319_v13 = vshrl.u32 %v318_v12, 30 }
 0x10c   : > { %v320_v14 = vshll.u32 %v319_v13, 30  ;;  %v343_v36 = vsub.s32 4, %v319_v13 }
 0x10e   : > { %v321_v15 = vsub.s32 %v317_v11, %v320_v14  ;;  %v344_v39 = vsel %vm259_vm9, %v343_v36, %v319_v13 }
 0x10f   : > { %v346_v40 = vsel %vm258_vm10, 0, %v344_v39 }
 0x110   : > { %v323_v16 = vsub.s32 0, %v321_v15  ;;  %v350_v41 = vadd.s32 3, %v346_v40 }
 0x112   : > { %v614_v17 = vmin.u32 %v323_v16, %v321_v15  ;;  %v351_v42 = vand.u32 3, %v350_v41 }
 0x114   : > { %v325_v18 = vclz %v614_v17  ;;  %vm356_vm11 = vcmp.eq.s32.totalorder %v351_v42, 2  ;;  %vm353_vm12 = vcmp.eq.s32.totalorder %v351_v42, 0  ;;  %vm352_vm13 = vcmp.lt.s32.totalorder %v351_v42, 2 }
 0x116   : > { %v615_v19 = vadd.s32 4294967294, %v325_v18 }
 0x118   : > { %vm616_vm8 = vcmp.lt.s32.totalorder %v615_v19, 0 }
 0x119   : > { %v328_v21 = vsel %vm616_vm8, 0, %v615_v19 }
 0x11a   : > { %v329_v23 = vsub.s32 32, %v328_v21  ;;  %v333_v24 = vsub.s32 4294967266, %v328_v21  ;;  %v330_v25 = vshll.u32 %v321_v15, %v328_v21 }
 0x11c   : > { %v331_v27 = vshrl.u32 %v313_v22, %v329_v23  ;;  %v334_v28 = vadd.s32 127, %v333_v24 }
 0x11e   : > { %v332_v29 = vor.u32 %v331_v27, %v330_v25  ;;  %v335_v30 = vshll.u32 %v334_v28, 23 }
 0x120   : > { %v336_v31 = vor.u32 4788187, %v335_v30  ;;  %v339_v33 = vcvt.s32.f32 %v332_v29 }
 0x122   : > { %v337_v32 = vand.u32 2147483647, %v336_v31 }
 0x124   : > { %v340_v34 = vmul.f32 %v339_v33, %v337_v32 }
 0x126   : > { %v341_v35 = vxor.u32 2147483648, %v340_v34 }
 0x128   : > { %v342_v37 = vsel %vm259_vm9, %v341_v35, %v340_v34 }
 0x129   : > { %v345_v38 = vsel %vm258_vm10, %v980_v20, %v342_v37 }
 0x12a   : > { %752 = vcosq.f32 %v345_v38 }
 0x12b   : > { %754 = vsinq.f32 %v345_v38 }
 0x137   : > { %v753_v43 = vpop.eup %752 }
 0x138   : > { %v755_v44 = vpop.eup %754  ;;  %v357_v45 = vxor.u32 2147483648, %v753_v43 }
 0x139   : > { %v354_v46 = vxor.u32 2147483648, %v755_v44 }
 0x13a   : > { %v358_v47 = vsel %vm356_vm11, %v357_v45, %v755_v44 }
 0x13b   : > { %v355_v26 = vsel %vm353_vm12, %v753_v43, %v354_v46 }
 0x13c   : > { %v359_v48 = vsel %vm352_vm13, %v355_v26, %v358_v47 }
 0x13d   : > { %v360_v49 = vsel %vm349_vm14, nan, %v359_v48 }
 0x13e   : > { %686 = vmatmul.mubr.f32.vlgmr.msra.gmra.mxu0 %v360_v49 }
 0x1fe   : > { %v514_v52 = vpop.f32.mrf.mxu0 }
 0x1ff   : > { %v515_v53 = vadd.f32 %v514_v52, %v444_v50 }
 0x200   : > { %v687_v20 = vpop.f32.mrf.mxu0 }
 0x201   : > { %518 = vst [vmem:[%s176_s26] sm:$0xff] %v515_v53 }
 0x202   : > { %795 = shalt.err (!%p792_p0)
}
 0x203   : > { %s796_s8 = scalar_lea.hbm %s1006_s30, 128  ;;  %s800_s11 = scalar_lea.hbm %s1044_s3, 256 }
 0x204   : > { %p797_p1 = scmp.ne.s32.totalorder %s1006_s30, %s796_s8  ;;  %p801_p4 = scmp.lt.s32.totalorder %s1006_s30, %s1044_s3 }
 0x205   : > { %p802_p7 = scmp.lt.s32.totalorder %s800_s11, %s796_s8 }
 0x206   : > { %p798_p2 = pnand %p797_p1, %p918_p5 }
 0x207   : > { %p803_p8 = por %p802_p7, %p801_p4 }
 0x208   : > { %p799_p3 = pneg %p798_p2 }
 0x20a   : > { %p804_p6 = pnand %p803_p8, %p799_p3 }
 0x20c   : > { %807 = shalt.err (!%p804_p6)
}
 0x20d   : > { %696 = dma.vmem_to_hbm [thread:$0]  (%p918_p5), %s534_s27, 128, %s1006_s30, %s520_s4  }
 0x20e PF: > { %p708_p9 = scmp.ge.s32.totalorder %s846_s15, 2  ;;  %s545_s20 = sand.u32 1, %s834_s12  }
 0x20f   : > { %p1048_p10 = scmp.ne.s32.totalorder %s1046_s23, 0  ;;  %s546_s24 = scalar_lea.sflag [#allocation4], %s545_s20 }
 0x211   : > { %p703_p11 = pnand %p708_p9, %p1048_p10 }
 0x213   : > { %p704_p12 = pneg %p703_p11 }
 0x215   : > { %829 = dma.done.wait (%p704_p12), %s546_s24, 128  }
 0x216   : > { %831 = vsyncadd (%p704_p12), %s546_s24, 4294967168  ;;  %p14_p13 = scmp.ge.s32.totalorder %s905_s18, 4   ;;  %s1049_s12 = smov %s838_s13 }
 0x217   : > { %s1050_s13 = smov %s842_s14  ;;  %s1051_s14 = smov %s916_s21 }
 0x218   : > { %s1052_s15 = smov %s905_s18  ;;  %16 = sbr.rel (!%p14_p13) target bundleno = 4 (0x4), region = 72 }
 0x21d   :  { %551 = vsyncpa [#allocation3], 1 }
 0x21e   :  { %553 = vsyncpa [#allocation3 + $0x1], 1 }
 0x21f   :  { %554 = vsyncpa [#allocation4], 1 }
 0x220   :  { %556 = vsyncpa [#allocation4 + $0x1], 1 }

</bundles_post_ra>
